<compile_context>
chip_gen: v7x
topology: tpu7x:2x2x1
jax: 0.10.0
libtpu: 0.0.40
codegen_flags: <defaults>
</compile_context>

<pallas_src>
import functools

import jax
import jax.numpy as jnp
from jax.experimental import pallas as pl
from jax.experimental.pallas import tpu as pltpu


def _merge_proj_kernel(xg_ref, w_ref, y_ref, sum_ref, ssq_ref):
    # xg_ref : (7, C_in, TN)  gathered neighbors, node axis on lanes
    # w_ref  : (C_out, C_in)  1x1 conv weight (constant block, stays resident)
    # y_ref  : (C_out, TN)    pre-BN output tile (lane-dense stores)
    # sum_ref, ssq_ref : (C_out, 1)  per-channel running sum / sum-of-squares
    @pl.when(pl.program_id(0) == 0)
    def _():
        sum_ref[...] = jnp.zeros_like(sum_ref)
        ssq_ref[...] = jnp.zeros_like(ssq_ref)

    # 7-neighbor average: 6 lane-dense VPU adds + 1 scalar multiply.
    acc = xg_ref[0]
    for k in range(1, 7):
        acc = acc + xg_ref[k]
    xm = acc * jnp.float32(1.0 / 7.0)                                # (C_in, TN)

    # 1x1 Conv1d == one 2-D MXU matmul with a lane-dense output.
    y = jnp.dot(w_ref[...], xm, preferred_element_type=jnp.float32)  # (C_out, TN)
    y_ref[...] = y

    # BatchNorm batch statistics (bias-free, so zero-padded columns add 0).
    sum_ref[...] += jnp.sum(y, axis=-1, keepdims=True)
    ssq_ref[...] += jnp.sum(y * y, axis=-1, keepdims=True)


def _bn_apply_kernel(y_ref, scale_ref, shift_ref, o_ref):
    # Folded BatchNorm: one per-channel FMA per element.
    o_ref[...] = y_ref[...] * scale_ref[...] + shift_ref[...]


@functools.partial(jax.jit, static_argnames=("eps", "tile_n"))
def patch_merging_layer_average(x, neigh_orders, w, b, gamma, beta,
                                eps=1e-5, tile_n=512):
    """x: (B, C_in, N_in) f32; neigh_orders: (>= N_out*7,) int32 indices.

    `b` (the Conv1d bias) is accepted for API parity but is mathematically
    cancelled by the batch-statistic mean subtraction of BatchNorm1d with
    track_running_stats=False, so it is not used.
    """
    B, C_in, N_in = x.shape
    N_out = (N_in + 6) // 4
    C_out = w.shape[0]
    n_cols = B * N_out

    # Reorder the neighbor table so the node index becomes the lane axis.
    idx = neigh_orders[: N_out * 7].reshape(N_out, 7).T              # (7, N_out)
    # Gather + layout glue (XLA): (B, C_in, 7, N_out) -> (7, C_in, B*N_out).
    gathered = jnp.take(x, idx, axis=2)                              # (B, C_in, 7, N_out)
    xg = jnp.transpose(gathered, (2, 1, 0, 3)).reshape(7, C_in, n_cols)
    xg = xg.astype(jnp.float32)

    # Pad the node axis with zeros to a multiple of the lane tile. Padded
    # columns stay exactly zero through the (bias-free) matmul, so the BN
    # sums are unaffected; we divide by the true count below.
    n_pad = ((n_cols + tile_n - 1) // tile_n) * tile_n
    if n_pad != n_cols:
        xg = jnp.pad(xg, ((0, 0), (0, 0), (0, n_pad - n_cols)))
    grid_n = n_pad // tile_n

    cost = pl.CostEstimate(
        flops=2 * C_out * C_in * n_pad + 7 * C_in * n_pad,
        transcendentals=0,
        bytes_accessed=4 * (7 * C_in * n_pad + C_out * C_in + C_out * n_pad),
    )

    # ---- Pass 1: neighbor mean + 1x1 conv + per-channel stat accumulation ----
    y2d, y_sum, y_ssq = pl.pallas_call(
        _merge_proj_kernel,
        out_shape=(
            jax.ShapeDtypeStruct((C_out, n_pad), jnp.float32),
            jax.ShapeDtypeStruct((C_out, 1), jnp.float32),
            jax.ShapeDtypeStruct((C_out, 1), jnp.float32),
        ),
        grid=(grid_n,),
        in_specs=[
            pl.BlockSpec((7, C_in, tile_n), lambda n: (0, 0, n)),
            pl.BlockSpec((C_out, C_in), lambda n: (0, 0)),
        ],
        out_specs=(
            pl.BlockSpec((C_out, tile_n), lambda n: (0, n)),
            pl.BlockSpec((C_out, 1), lambda n: (0, 0)),
            pl.BlockSpec((C_out, 1), lambda n: (0, 0)),
        ),
        compiler_params=pltpu.CompilerParams(
            dimension_semantics=("arbitrary",)),
        cost_estimate=cost,
    )(xg, w.astype(jnp.float32))

    # Fold BatchNorm (biased batch variance over (B, N) per channel) into a
    # single per-channel scale/shift. Tiny (C_out,)-sized math -> plain JAX.
    n_true = jnp.float32(n_cols)
    mu = y_sum[:, 0] / n_true
    var = jnp.maximum(y_ssq[:, 0] / n_true - mu * mu, 0.0)
    scale = gamma.astype(jnp.float32) * jax.lax.rsqrt(var + eps)
    shift = beta.astype(jnp.float32) - mu * scale

    # ---- Pass 2: apply folded BN in place over y (lane-dense FMA) ----
    out2d = pl.pallas_call(
        _bn_apply_kernel,
        out_shape=jax.ShapeDtypeStruct((C_out, n_pad), jnp.float32),
        grid=(grid_n,),
        in_specs=[
            pl.BlockSpec((C_out, tile_n), lambda n: (0, n)),
            pl.BlockSpec((C_out, 1), lambda n: (0, 0)),
            pl.BlockSpec((C_out, 1), lambda n: (0, 0)),
        ],
        out_specs=pl.BlockSpec((C_out, tile_n), lambda n: (0, n)),
        input_output_aliases={0: 0},  # normalize y in place, no extra HBM buffer
        compiler_params=pltpu.CompilerParams(
            dimension_semantics=("parallel",)),
    )(y2d, scale.reshape(C_out, 1), shift.reshape(C_out, 1))

    # (C_out, B*N_out) -> (B, C_out, N_out)
    out = out2d[:, :n_cols].reshape(C_out, B, N_out)
    return jnp.transpose(out, (1, 0, 2))


def _reference(x, neigh_orders, w, b, gamma, beta, eps=1e-5):
    """Pure-JAX mirror of the PyTorch forward, for correctness checking."""
    B, C_in, N_in = x.shape
    N_out = (N_in + 6) // 4
    xg = jnp.take(x, neigh_orders[: N_out * 7], axis=2).reshape(B, C_in, N_out, 7)
    xm = jnp.mean(xg, axis=-1)                                   # (B, C_in, N_out)
    y = jnp.einsum("oc,bcn->bon", w, xm) + b[None, :, None]      # (B, C_out, N_out)
    mu = jnp.mean(y, axis=(0, 2), keepdims=True)
    var = jnp.mean((y - mu) ** 2, axis=(0, 2), keepdims=True)
    return (y - mu) / jnp.sqrt(var + eps) * gamma[None, :, None] + beta[None, :, None]


if __name__ == "__main__":
    # Small icosahedral-style sizes: N_in = 42 -> N_out = (42 + 6) // 4 = 12
    B, C_in, C_out, N_in = 2, 4, 8, 42
    N_out = (N_in + 6) // 4

    key = jax.random.PRNGKey(0)
    kx, kn, kw, kb, kg, kbeta = jax.random.split(key, 6)

    x = jax.random.normal(kx, (B, C_in, N_in), dtype=jnp.float32)
    # Deterministic synthetic neighborhood table (indices into the N_in nodes).
    neigh_orders = jax.random.randint(kn, (N_in * 7,), 0, N_in, dtype=jnp.int32)

    # Deterministic synthetic parameters (Conv1d 1x1 weight/bias, BN gamma/beta).
    w = jax.random.normal(kw, (C_out, C_in), dtype=jnp.float32) * 0.1
    b = jax.random.normal(kb, (C_out,), dtype=jnp.float32) * 0.1
    gamma = 1.0 + 0.1 * jax.random.normal(kg, (C_out,), dtype=jnp.float32)
    beta = 0.1 * jax.random.normal(kbeta, (C_out,), dtype=jnp.float32)

    out = patch_merging_layer_average(x, neigh_orders, w, b, gamma, beta)
    out = jax.block_until_ready(out)

    ref = _reference(x, neigh_orders, w, b, gamma, beta)
    assert out.shape == (B, C_out, N_out)
    assert jnp.allclose(out, ref, atol=1e-4, rtol=1e-4), "mismatch vs reference"

    print("KERNEL_OK")
</pallas_src>

<mosaic_0001>
module attributes {stable_mosaic.version = 11 : i64} {
  func.func @_merge_proj_kernel(%arg0: i32, %arg1: memref<7x4x512xf32, #tpu.memory_space<vmem>>, %arg2: memref<8x4xf32, #tpu.memory_space<vmem>>, %arg3: memref<8x512xf32, #tpu.memory_space<vmem>>, %arg4: memref<8x1xf32, #tpu.memory_space<vmem>>, %arg5: memref<8x1xf32, #tpu.memory_space<vmem>>) attributes {dimension_semantics = [#tpu.dimension_semantics<arbitrary>], iteration_bounds = array<i64: 1>, scalar_prefetch = 0 : i64, scratch_operands = 0 : i64, tpu.core_type = #tpu.core_type<tc>, window_params = [{transform_indices = @transform_0, window_bounds = array<i64: 7, 4, 512>}, {pipeline_mode = #tpu.pipeline_mode<synchronous>, transform_indices = @transform_1, window_bounds = array<i64: 8, 4>}, {transform_indices = @transform_2, window_bounds = array<i64: 8, 512>}, {pipeline_mode = #tpu.pipeline_mode<synchronous>, transform_indices = @transform_3, window_bounds = array<i64: 8, 1>}, {pipeline_mode = #tpu.pipeline_mode<synchronous>, transform_indices = @transform_4, window_bounds = array<i64: 8, 1>}]} {
    %c0_i32 = arith.constant 0 : i32
    %0 = arith.cmpi eq, %arg0, %c0_i32 : i32
    %1 = arith.extui %0 : i1 to i32
    %c0_i32_0 = arith.constant 0 : i32
    %2 = arith.cmpi ne, %1, %c0_i32_0 : i32
    scf.if %2 {
      %cst_30 = arith.constant 0.000000e+00 : f32
      %39 = vector.broadcast %cst_30 : f32 to vector<8x1xf32>
      %c0_31 = arith.constant 0 : index
      %c0_32 = arith.constant 0 : index
      %40 = vector.load %arg4[%c0_31, %c0_32] : memref<8x1xf32, #tpu.memory_space<vmem>>, vector<8x1xf32>
      tpu.vector_store %arg4[%c0_31, %c0_32], %39 {strides = array<i32>} : memref<8x1xf32, #tpu.memory_space<vmem>>, vector<8x1xf32>,
      %cst_33 = arith.constant 0.000000e+00 : f32
      %41 = vector.broadcast %cst_33 : f32 to vector<8x1xf32>
      %c0_34 = arith.constant 0 : index
      %c0_35 = arith.constant 0 : index
      %42 = vector.load %arg5[%c0_34, %c0_35] : memref<8x1xf32, #tpu.memory_space<vmem>>, vector<8x1xf32>
      tpu.vector_store %arg5[%c0_34, %c0_35], %41 {strides = array<i32>} : memref<8x1xf32, #tpu.memory_space<vmem>>, vector<8x1xf32>,
    } else {
    }
    %c0 = arith.constant 0 : index
    %c0_1 = arith.constant 0 : index
    %c0_2 = arith.constant 0 : index
    %3 = vector.load %arg1[%c0, %c0_1, %c0_2] : memref<7x4x512xf32, #tpu.memory_space<vmem>>, vector<1x4x512xf32>
    %4 = vector.shape_cast %3 : vector<1x4x512xf32> to vector<4x512xf32>
    %c1 = arith.constant 1 : index
    %c0_3 = arith.constant 0 : index
    %c0_4 = arith.constant 0 : index
    %5 = vector.load %arg1[%c1, %c0_3, %c0_4] : memref<7x4x512xf32, #tpu.memory_space<vmem>>, vector<1x4x512xf32>
    %6 = vector.shape_cast %5 : vector<1x4x512xf32> to vector<4x512xf32>
    %7 = arith.addf %4, %6 : vector<4x512xf32>
    %c2 = arith.constant 2 : index
    %c0_5 = arith.constant 0 : index
    %c0_6 = arith.constant 0 : index
    %8 = vector.load %arg1[%c2, %c0_5, %c0_6] : memref<7x4x512xf32, #tpu.memory_space<vmem>>, vector<1x4x512xf32>
    %9 = vector.shape_cast %8 : vector<1x4x512xf32> to vector<4x512xf32>
    %10 = arith.addf %7, %9 : vector<4x512xf32>
    %c3 = arith.constant 3 : index
    %c0_7 = arith.constant 0 : index
    %c0_8 = arith.constant 0 : index
    %11 = vector.load %arg1[%c3, %c0_7, %c0_8] : memref<7x4x512xf32, #tpu.memory_space<vmem>>, vector<1x4x512xf32>
    %12 = vector.shape_cast %11 : vector<1x4x512xf32> to vector<4x512xf32>
    %13 = arith.addf %10, %12 : vector<4x512xf32>
    %c4 = arith.constant 4 : index
    %c0_9 = arith.constant 0 : index
    %c0_10 = arith.constant 0 : index
    %14 = vector.load %arg1[%c4, %c0_9, %c0_10] : memref<7x4x512xf32, #tpu.memory_space<vmem>>, vector<1x4x512xf32>
    %15 = vector.shape_cast %14 : vector<1x4x512xf32> to vector<4x512xf32>
    %16 = arith.addf %13, %15 : vector<4x512xf32>
    %c5 = arith.constant 5 : index
    %c0_11 = arith.constant 0 : index
    %c0_12 = arith.constant 0 : index
    %17 = vector.load %arg1[%c5, %c0_11, %c0_12] : memref<7x4x512xf32, #tpu.memory_space<vmem>>, vector<1x4x512xf32>
    %18 = vector.shape_cast %17 : vector<1x4x512xf32> to vector<4x512xf32>
    %19 = arith.addf %16, %18 : vector<4x512xf32>
    %c6 = arith.constant 6 : index
    %c0_13 = arith.constant 0 : index
    %c0_14 = arith.constant 0 : index
    %20 = vector.load %arg1[%c6, %c0_13, %c0_14] : memref<7x4x512xf32, #tpu.memory_space<vmem>>, vector<1x4x512xf32>
    %21 = vector.shape_cast %20 : vector<1x4x512xf32> to vector<4x512xf32>
    %22 = arith.addf %19, %21 : vector<4x512xf32>
    %cst = arith.constant 0.142857149 : f32
    %23 = vector.broadcast %cst : f32 to vector<4x512xf32>
    %24 = arith.mulf %22, %23 : vector<4x512xf32>
    %c0_15 = arith.constant 0 : index
    %c0_16 = arith.constant 0 : index
    %25 = vector.load %arg2[%c0_15, %c0_16] : memref<8x4xf32, #tpu.memory_space<vmem>>, vector<8x4xf32>
    %cst_17 = arith.constant dense<0.000000e+00> : vector<8x512xf32>
    %26 = tpu.matmul %25, %24, %cst_17 {dimension_numbers = #tpu.dot_dimension_numbers<[1], [0], [0], [1], [0, 0, 1, 1], [], []>} : vector<8x4xf32>, vector<4x512xf32>, vector<8x512xf32> -> vector<8x512xf32>
    %c0_18 = arith.constant 0 : index
    %c0_19 = arith.constant 0 : index
    %27 = vector.load %arg3[%c0_18, %c0_19] : memref<8x512xf32, #tpu.memory_space<vmem>>, vector<8x512xf32>
    tpu.vector_store %arg3[%c0_18, %c0_19], %26 {strides = array<i32>} : memref<8x512xf32, #tpu.memory_space<vmem>>, vector<8x512xf32>,
    %c0_20 = arith.constant 0 : index
    %c0_21 = arith.constant 0 : index
    %28 = vector.load %arg4[%c0_20, %c0_21] : memref<8x1xf32, #tpu.memory_space<vmem>>, vector<8x1xf32>
    %cst_22 = arith.constant dense<0.000000e+00> : vector<8xf32>
    %29 = vector.multi_reduction <add>, %26, %cst_22 [1] : vector<8x512xf32> to vector<8xf32>
    %30 = vector.shape_cast %29 : vector<8xf32> to vector<8x1xf32>
    %31 = arith.addf %28, %30 : vector<8x1xf32>
    %c0_23 = arith.constant 0 : index
    %c0_24 = arith.constant 0 : index
    %32 = vector.load %arg4[%c0_23, %c0_24] : memref<8x1xf32, #tpu.memory_space<vmem>>, vector<8x1xf32>
    tpu.vector_store %arg4[%c0_23, %c0_24], %31 {strides = array<i32>} : memref<8x1xf32, #tpu.memory_space<vmem>>, vector<8x1xf32>,
    %c0_25 = arith.constant 0 : index
    %c0_26 = arith.constant 0 : index
    %33 = vector.load %arg5[%c0_25, %c0_26] : memref<8x1xf32, #tpu.memory_space<vmem>>, vector<8x1xf32>
    %34 = arith.mulf %26, %26 : vector<8x512xf32>
    %cst_27 = arith.constant dense<0.000000e+00> : vector<8xf32>
    %35 = vector.multi_reduction <add>, %34, %cst_27 [1] : vector<8x512xf32> to vector<8xf32>
    %36 = vector.shape_cast %35 : vector<8xf32> to vector<8x1xf32>
    %37 = arith.addf %33, %36 : vector<8x1xf32>
    %c0_28 = arith.constant 0 : index
    %c0_29 = arith.constant 0 : index
    %38 = vector.load %arg5[%c0_28, %c0_29] : memref<8x1xf32, #tpu.memory_space<vmem>>, vector<8x1xf32>
    tpu.vector_store %arg5[%c0_28, %c0_29], %37 {strides = array<i32>} : memref<8x1xf32, #tpu.memory_space<vmem>>, vector<8x1xf32>,
    return
  }
  func.func @transform_0(%arg0: i32) -> (i32, i32, i32) {
    %c0_i32 = arith.constant 0 : i32
    %c0_i32_0 = arith.constant 0 : i32
    %c0_i32_1 = arith.constant 0 : i32
    return %c0_i32, %c0_i32_0, %arg0 : i32, i32, i32
  }
  func.func @transform_1(%arg0: i32) -> (i32, i32) {
    %c0_i32 = arith.constant 0 : i32
    %c0_i32_0 = arith.constant 0 : i32
    %c0_i32_1 = arith.constant 0 : i32
    return %c0_i32, %c0_i32_0 : i32, i32
  }
  func.func @transform_2(%arg0: i32) -> (i32, i32) {
    %c0_i32 = arith.constant 0 : i32
    %c0_i32_0 = arith.constant 0 : i32
    return %c0_i32, %arg0 : i32, i32
  }
  func.func @transform_3(%arg0: i32) -> (i32, i32) {
    %c0_i32 = arith.constant 0 : i32
    %c0_i32_0 = arith.constant 0 : i32
    %c0_i32_1 = arith.constant 0 : i32
    return %c0_i32, %c0_i32_0 : i32, i32
  }
  func.func @transform_4(%arg0: i32) -> (i32, i32) {
    %c0_i32 = arith.constant 0 : i32
    %c0_i32_0 = arith.constant 0 : i32
    %c0_i32_1 = arith.constant 0 : i32
    return %c0_i32, %c0_i32_0 : i32, i32
  }
}

module attributes {stable_mosaic.version = 11 : i64} {
  func.func @_bn_apply_kernel(%arg0: i32, %arg1: memref<8x512xf32, #tpu.memory_space<vmem>>, %arg2: memref<8x1xf32, #tpu.memory_space<vmem>>, %arg3: memref<8x1xf32, #tpu.memory_space<vmem>>, %arg4: memref<8x512xf32, #tpu.memory_space<vmem>>) attributes {dimension_semantics = [#tpu.dimension_semantics<parallel>], iteration_bounds = array<i64: 1>, scalar_prefetch = 0 : i64, scratch_operands = 0 : i64, tpu.core_type = #tpu.core_type<tc>, window_params = [{transform_indices = @transform_0, window_bounds = array<i64: 8, 512>}, {pipeline_mode = #tpu.pipeline_mode<synchronous>, transform_indices = @transform_1, window_bounds = array<i64: 8, 1>}, {pipeline_mode = #tpu.pipeline_mode<synchronous>, transform_indices = @transform_2, window_bounds = array<i64: 8, 1>}, {transform_indices = @transform_3, window_bounds = array<i64: 8, 512>}]} {
    %c0 = arith.constant 0 : index
    %c0_0 = arith.constant 0 : index
    %0 = vector.load %arg1[%c0, %c0_0] : memref<8x512xf32, #tpu.memory_space<vmem>>, vector<8x512xf32>
    %c0_1 = arith.constant 0 : index
    %c0_2 = arith.constant 0 : index
    %1 = vector.load %arg2[%c0_1, %c0_2] : memref<8x1xf32, #tpu.memory_space<vmem>>, vector<8x1xf32>
    %2 = vector.broadcast %1 : vector<8x1xf32> to vector<8x512xf32>
    %3 = arith.mulf %0, %2 : vector<8x512xf32>
    %c0_3 = arith.constant 0 : index
    %c0_4 = arith.constant 0 : index
    %4 = vector.load %arg3[%c0_3, %c0_4] : memref<8x1xf32, #tpu.memory_space<vmem>>, vector<8x1xf32>
    %5 = vector.broadcast %4 : vector<8x1xf32> to vector<8x512xf32>
    %6 = arith.addf %3, %5 : vector<8x512xf32>
    %c0_5 = arith.constant 0 : index
    %c0_6 = arith.constant 0 : index
    %7 = vector.load %arg4[%c0_5, %c0_6] : memref<8x512xf32, #tpu.memory_space<vmem>>, vector<8x512xf32>
    tpu.vector_store %arg4[%c0_5, %c0_6], %6 {strides = array<i32>} : memref<8x512xf32, #tpu.memory_space<vmem>>, vector<8x512xf32>,
    return
  }
  func.func @transform_0(%arg0: i32) -> (i32, i32) {
    %c0_i32 = arith.constant 0 : i32
    %c0_i32_0 = arith.constant 0 : i32
    return %c0_i32, %arg0 : i32, i32
  }
  func.func @transform_1(%arg0: i32) -> (i32, i32) {
    %c0_i32 = arith.constant 0 : i32
    %c0_i32_0 = arith.constant 0 : i32
    %c0_i32_1 = arith.constant 0 : i32
    return %c0_i32, %c0_i32_0 : i32, i32
  }
  func.func @transform_2(%arg0: i32) -> (i32, i32) {
    %c0_i32 = arith.constant 0 : i32
    %c0_i32_0 = arith.constant 0 : i32
    %c0_i32_1 = arith.constant 0 : i32
    return %c0_i32, %c0_i32_0 : i32, i32
  }
  func.func @transform_3(%arg0: i32) -> (i32, i32) {
    %c0_i32 = arith.constant 0 : i32
    %c0_i32_0 = arith.constant 0 : i32
    return %c0_i32, %arg0 : i32, i32
  }
}

</mosaic_0001>

<bundles_post_ra>
// kernel: patch_merging_layer_average.3
= control target key start
LH: loop header
LB: loop body
LE: loop exit
PB: predicated region body
PF: predicated region fallthrough
CT: control target
= control target key end

     0   :  { %v48_v0 = vmov 0   ;;  %s99_s1 = inlined_call_operand.vmem [shape: f32[8,1], index: 1, kind: input, shape index: {}]   ;;  %s100_s2 = inlined_call_operand.vmem [shape: f32[8,1], index: 2, kind: input, shape index: {}]   ;;  %s101_s0 = inlined_call_operand.vmem [shape: f32[8,512], index: 0, kind: input, shape index: {}, may-alias: {0,3}]   ;;  %s102_s3 = inlined_call_operand.vmem [shape: f32[8,512], index: 3, kind: output, shape index: {}, may-alias: {0,3}]  }
   0x1   :  { %47 = vset.pattern.permute.xlu0 %v48_v0  ;;  %v18_v1 = vld [vmem:[%s99_s1] sm:$0xff]  ;;  %v15_v5 = vld [vmem:[%s101_s0 + $0x8] sm:$0xff]  ;;  %v16_v6 = vld [vmem:[%s101_s0 + $0x10] sm:$0xff] }
   0x2   :  { %21 = vperm.xlu0 %47, %v18_v1   ;;  %v28_v2 = vld [vmem:[%s100_s2] sm:$0xff]  ;;  %v17_v7 = vld [vmem:[%s101_s0 + $0x18] sm:$0xff] }
   0x3   :  { %v14_v3 = vld [vmem:[%s101_s0] sm:$0xff] }
   0x6   :  { %31 = vperm.xlu0 %47, %v28_v2  }
  0x81   :  { %v22_v4 = vpop.permute.xlu0 %21 }
  0x82   :  { %v24_v8 = vmul.f32 %v22_v4, %v14_v3  ;;  %v25_v9 = vmul.f32 %v22_v4, %v15_v5  ;;  %v26_v10 = vmul.f32 %v22_v4, %v16_v6  ;;  %v27_v11 = vmul.f32 %v22_v4, %v17_v7 }
  0x85   :  { %v32_v12 = vpop.permute.xlu0 %31 }
  0x86   :  { %v34_v13 = vadd.f32 %v32_v12, %v24_v8  ;;  %v35_v14 = vadd.f32 %v32_v12, %v25_v9  ;;  %v36_v15 = vadd.f32 %v32_v12, %v26_v10  ;;  %v37_v16 = vadd.f32 %v32_v12, %v27_v11 }
  0x88   :  { %38 = vst [vmem:[%s102_s3] sm:$0xff] %v34_v13  ;;  %39 = vst [vmem:[%s102_s3 + $0x8] sm:$0xff] %v35_v14 }
  0x89   :  { %40 = vst [vmem:[%s102_s3 + $0x10] sm:$0xff] %v36_v15  ;;  %41 = vst [vmem:[%s102_s3 + $0x18] sm:$0xff] %v37_v16 }

// kernel: patch_merging_layer_average.2
= control target key start
LH: loop header
LB: loop body
LE: loop exit
PB: predicated region body
PF: predicated region fallthrough
CT: control target
= control target key end

     0   :  { %v271_v3 = vmov 0.0   ;;  %vm64_vm0 = vcmask 1043456   ;;  %vm60_vm1 = vcmask 31744   ;;  %vm18_vm2 = vcmask 7168   ;;  %s380_s0 = inlined_call_operand.vmem [shape: f32[7,4,512], index: 0, kind: input, shape index: {}]   ;;  %s381_s1 = inlined_call_operand.vmem [shape: f32[8,4], index: 1, kind: input, shape index: {}]   ;;  %s382_s3 = inlined_call_operand.vmem [shape: f32[8,1], index: 3, kind: output, shape index: {1}]   ;;  %s383_s2 = inlined_call_operand.vmem [shape: f32[8,512], index: 2, kind: output, shape index: {0}]   ;;  %s384_s4 = inlined_call_operand.vmem [shape: f32[8,1], index: 4, kind: output, shape index: {2}]  }
   0x1   :  { %v21_v0 = vld [vmem:[%s380_s0] sm:$0xff]  ;;  %v252_v1 = vld [vmem:[%s380_s0 + $0x10] sm:$0xff]  ;;  %137 = vmatprep.mubr.f32.mxu0 %v271_v3  ;;  %208 = vmatprep.mubr.f32.mxu1 %v271_v3  ;;  %v22_v6 = vld [vmem:[%s380_s0 + $0x8] sm:$0xff]  ;;  %19 = vst.msk [vmem:[%s382_s3] sm:$0xff] %vm18_vm2, %v271_v3 }
   0x2   :  { %v254_v2 = vld [vmem:[%s380_s0 + $0x20] sm:$0xff]  ;;  %v26_v4 = vadd.f32 %v252_v1, %v21_v0  ;;  %v256_v5 = vld [vmem:[%s380_s0 + $0x30] sm:$0xff]  ;;  %v253_v8 = vld [vmem:[%s380_s0 + $0x18] sm:$0xff]  ;;  %20 = vst.msk [vmem:[%s384_s4] sm:$0xff] %vm18_vm2, %v271_v3 }
   0x3   :  { %v255_v9 = vld [vmem:[%s380_s0 + $0x28] sm:$0xff]  ;;  %v258_v10 = vld [vmem:[%s380_s0 + $0x40] sm:$0xff]  ;;  %v27_v11 = vadd.f32 %v253_v8, %v22_v6  ;;  %v257_v13 = vld [vmem:[%s380_s0 + $0x38] sm:$0xff] }
   0x4   :  { %v31_v7 = vadd.f32 %v254_v2, %v26_v4  ;;  %v260_v14 = vld [vmem:[%s380_s0 + $0x50] sm:$0xff]  ;;  %v259_v17 = vld [vmem:[%s380_s0 + $0x48] sm:$0xff]  ;;  %v262_v18 = vld [vmem:[%s380_s0 + $0x60] sm:$0xff] }
   0x5   :  { %v32_v15 = vadd.f32 %v255_v9, %v27_v11  ;;  %v261_v21 = vld [vmem:[%s380_s0 + $0x58] sm:$0xff]  ;;  %v263_v24 = vld [vmem:[%s380_s0 + $0x68] sm:$0xff]  ;;  %v55_v29 = vld [vmem:[%s381_s1] sm:$0xff] }
   0x6   :  { %v36_v12 = vadd.f32 %v256_v5, %v31_v7 }
   0x7   :  { %v37_v19 = vadd.f32 %v257_v13, %v32_v15 }
   0x8   :  { %v41_v16 = vadd.f32 %v258_v10, %v36_v12  ;;  %v219_v46 = vld [vmem:[%s382_s3] sm:$0xff] }
   0x9   :  { %v42_v22 = vadd.f32 %v259_v17, %v37_v19  ;;  %v228_v49 = vld [vmem:[%s384_s4] sm:$0xff] }
   0xa   :  { %v46_v20 = vadd.f32 %v260_v14, %v41_v16 }
   0xb   :  { %v47_v25 = vadd.f32 %v261_v21, %v42_v22 }
   0xc   :  { %v51_v23 = vadd.f32 %v262_v18, %v46_v20 }
   0xd   :  { %v52_v27 = vadd.f32 %v263_v24, %v47_v25 }
   0xe   :  { %v53_v26 = vmul.f32 0.14285715, %v51_v23 }
   0xf   :  { %v54_v30 = vmul.f32 0.14285715, %v52_v27 }
  0x10   :  { %v58_v28 = vcombine.high %v53_v26, %v53_v26 }
  0x11   :  { %v59_v31 = vcombine.high %v54_v30, %v54_v30 }
  0x12   :  { %264 = vmatprep.subr.msk.mxu0 %vm64_vm0, %v58_v28 }
  0x13   :  { %265 = vmatpush1.msk.msra.mxu0 %vm64_vm0, %v53_v26  ;;  %267 = vmatprep.subr.msk.mxu1 %vm64_vm0, %v59_v31 }
  0x14   :  { %266 = vmatmul.mubr.msk.f32.vlgmr.msra.gmra.mrb[0].mxu0 %vm60_vm1, %v55_v29  ;;  %268 = vmatpush1.msk.msra.mxu1 %vm64_vm0, %v54_v30 }
  0x15   :  { %269 = vmatmul.mubr.msk.f32.vlgmr.msra.gmra.mrb[0].mxu1 %vm60_vm1, %v55_v29 }
  0xe7   :  { %v139_v32 = vpop.f32.mrb[0].mxu0 }
  0xe8   :  { %215 = vst [vmem:[%s383_s2] sm:$0xff] %v139_v32  ;;  %v229_v33 = vmul.f32 %v139_v32, %v139_v32  ;;  %v141_v34 = vpop.f32.mrb[1].mxu0  ;;  %v210_v37 = vpop.f32.mrb[0].mxu1 }
  0xe9   :  { %216 = vst [vmem:[%s383_s2 + $0x8] sm:$0xff] %v141_v34  ;;  %v220_v35 = vadd.f32 %v141_v34, %v139_v32  ;;  %v230_v36 = vmul.f32 %v141_v34, %v141_v34  ;;  %217 = vst [vmem:[%s383_s2 + $0x10] sm:$0xff] %v210_v37  ;;  %v231_v39 = vmul.f32 %v210_v37, %v210_v37  ;;  %v212_v40 = vpop.f32.mrb[1].mxu1 }
  0xea   :  { %218 = vst [vmem:[%s383_s2 + $0x18] sm:$0xff] %v212_v40  ;;  %v232_v42 = vmul.f32 %v212_v40, %v212_v40 }
  0xeb   :  { %v233_v38 = vadd.f32 %v230_v36, %v229_v33  ;;  %v221_v41 = vadd.f32 %v220_v35, %v210_v37 }
  0xed   :  { %v222_v43 = vadd.f32 %v221_v41, %v212_v40  ;;  %v234_v44 = vadd.f32 %v233_v38, %v231_v39 }
  0xef   :  { %223 = vadd.xlane.f32.xlu0 %v222_v43  ;;  %v235_v45 = vadd.f32 %v234_v44, %v232_v42 }
  0xf3   :  { %236 = vadd.xlane.f32.xlu0 %v235_v45 }
 0x17c   :  { %v224_v47 = vpop.xlane.xlu0 %223 }
 0x17d   :  { %v225_v48 = vadd.f32 %v224_v47, %v219_v46 }
 0x17f   :  { %227 = vst.msk [vmem:[%s382_s3] sm:$0xff] %vm18_vm2, %v225_v48 }
 0x180   :  { %v237_v50 = vpop.xlane.xlu0 %236 }
 0x181   :  { %v238_v51 = vadd.f32 %v237_v50, %v228_v49 }
 0x183   :  { %239 = vst.msk [vmem:[%s384_s4] sm:$0xff] %vm18_vm2, %v238_v51 }

</bundles_post_ra>
